<compile_context>
chip_gen: v6e
topology: v6e:2x2x1
jax: 0.10.0
libtpu: 0.0.40
codegen_flags: <defaults>
</compile_context>

<pallas_src>
import functools

import jax
import jax.numpy as jnp
from jax.experimental import pallas as pl
from jax.experimental.pallas import tpu as pltpu

_EPS = 1e-5


def _vmem_limit(bytes_needed):
    """Explicit scoped-VMEM request sized from the actual pipeline buffers."""
    return int(min(max(bytes_needed, 32 << 20), 100 << 20))


def _pick_tn(n, bytes_per_n, target_bytes=2 << 20, max_bytes=8 << 20):
    """Largest divisor of n whose per-block bytes stay <= max (aim ~target)."""
    best = 1
    for cand in range(1, n + 1):
        if n % cand:
            continue
        if cand * bytes_per_n > max_bytes:
            break
        best = cand
        if cand * bytes_per_n >= target_bytes:
            break
    return best


# ----------------------------------------------------------------------------
# Even-C fast path kernels: x viewed as (N, 2, half, HW)
# ----------------------------------------------------------------------------
def _bn_stats_kernel(x_ref, g_ref, b_ref, mean_ref, m2_ref,
                     *, block_count, total_count):
    """Streaming per-channel batch stats of the BN half.

    Grid axis 0 is a reduction over batch blocks ('arbitrary').  The two
    outputs keep a constant block index, so they stay resident in VMEM and act
    as running (mean, M2) accumulators (Chan's parallel combine).  On the last
    step they are rewritten in place as the fused BN (scale, shift).
    """
    step = pl.program_id(0)

    x = x_ref[...].astype(jnp.float32)                       # (TN, 1, C2, HW)
    # Lane reduce first (HW), then fold the small TN leading axis.
    s = jnp.sum(x, axis=3, keepdims=True)                    # (TN, 1, C2, 1)
    mean_b = jnp.sum(s, axis=0, keepdims=True) * (1.0 / block_count)
    d2 = jnp.square(x - mean_b)
    m2_b = jnp.sum(jnp.sum(d2, axis=3, keepdims=True), axis=0, keepdims=True)

    @pl.when(step == 0)
    def _init():
        mean_ref[...] = mean_b
        m2_ref[...] = m2_b

    @pl.when(step > 0)
    def _combine():
        n_a = step.astype(jnp.float32) * block_count
        n_ab = n_a + block_count
        delta = mean_b - mean_ref[...]
        mean_ref[...] = mean_ref[...] + delta * (block_count / n_ab)
        m2_ref[...] = (m2_ref[...] + m2_b
                       + delta * delta * (n_a * block_count / n_ab))

    @pl.when(step == pl.num_programs(0) - 1)
    def _finalize():
        mean = mean_ref[...]
        var = jnp.maximum(m2_ref[...] * (1.0 / total_count), 0.0)
        scale = jax.lax.rsqrt(var + _EPS) * g_ref[...]
        mean_ref[...] = scale
        m2_ref[...] = b_ref[...] - mean * scale


def _ibn_apply_kernel(x_ref, gin_ref, bin_ref, sbn_ref, tbn_ref, o_ref,
                      *, inv_hw):
    """Normalize one (TN, 2, half, HW) batch block; write both halves in place."""
    # ---- InstanceNorm2d(affine=True): split index 0 ------------------------
    xin = x_ref[:, 0:1, :, :].astype(jnp.float32)            # (TN, 1, C1, HW)
    mu = jnp.sum(xin, axis=-1, keepdims=True) * inv_hw
    var = jnp.sum(jnp.square(xin - mu), axis=-1, keepdims=True) * inv_hw
    a = jax.lax.rsqrt(var + _EPS) * gin_ref[...]              # (TN, 1, C1, 1)
    b = bin_ref[...] - mu * a
    o_ref[:, 0:1, :, :] = (xin * a + b).astype(o_ref.dtype)

    # ---- BatchNorm2d (precomputed fused batch scale/shift): split index 1 --
    xbn = x_ref[:, 1:2, :, :].astype(jnp.float32)
    o_ref[:, 1:2, :, :] = (xbn * sbn_ref[...] + tbn_ref[...]).astype(o_ref.dtype)


def _ibn_forward_even(x, gamma_in, beta_in, gamma_bn, beta_bn, max_block_bytes):
    N, C, H, W = x.shape
    half = C // 2
    HW = H * W
    itemsize = x.dtype.itemsize

    # Free, contiguous reshape: split axis becomes a tile-aligned leading axis.
    x4 = x.reshape(N, 2, half, HW)
    gin = gamma_in.astype(jnp.float32).reshape(1, 1, half, 1)
    bin_ = beta_in.astype(jnp.float32).reshape(1, 1, half, 1)
    gbn = gamma_bn.astype(jnp.float32).reshape(1, 1, half, 1)
    bbn = beta_bn.astype(jnp.float32).reshape(1, 1, half, 1)

    tn = _pick_tn(N, C * HW * itemsize, max_bytes=max_block_bytes)
    grid = (N // tn,)

    p_spec = pl.BlockSpec((1, 1, half, 1), lambda n: (0, 0, 0, 0))
    x_bn_spec = pl.BlockSpec((tn, 1, half, HW), lambda n: (n, 1, 0, 0))
    x_full_spec = pl.BlockSpec((tn, 2, half, HW), lambda n: (n, 0, 0, 0))

    blk1 = tn * half * HW * itemsize          # pass-1 input block (BN half only)
    blk2 = tn * C * HW * itemsize             # pass-2 input/output block

    # Pass 1: BN batch statistics over (N, HW) for the BN half ONLY.
    scale_bn, shift_bn = pl.pallas_call(
        functools.partial(_bn_stats_kernel,
                          block_count=float(tn * HW),
                          total_count=float(N * HW)),
        out_shape=(jax.ShapeDtypeStruct((1, 1, half, 1), jnp.float32),
                   jax.ShapeDtypeStruct((1, 1, half, 1), jnp.float32)),
        grid=grid,
        in_specs=[x_bn_spec, p_spec, p_spec],
        out_specs=(p_spec, p_spec),
        compiler_params=pltpu.CompilerParams(
            dimension_semantics=("arbitrary",),
            vmem_limit_bytes=_vmem_limit(2 * blk1 + (2 << 20))),
    )(x4, gbn, bbn)
    # TODO(synk): on v7x, split this reduction across both TensorCores
    # (grid (2, N//(2*tn)) with a parallel core axis + a partial-stat combine).

    # Pass 2: IN per-(n,c) + fused BN scale/shift; one lane-dense output write.
    out4 = pl.pallas_call(
        functools.partial(_ibn_apply_kernel, inv_hw=1.0 / HW),
        out_shape=jax.ShapeDtypeStruct((N, 2, half, HW), x.dtype),
        grid=grid,
        in_specs=[x_full_spec, p_spec, p_spec, p_spec, p_spec],
        out_specs=x_full_spec,
        compiler_params=pltpu.CompilerParams(
            dimension_semantics=("parallel",),
            vmem_limit_bytes=_vmem_limit(4 * blk2 + (2 << 20))),
    )(x4, gin, bin_, scale_bn, shift_bn)
    # TODO(synk): for very large C*HW on v7x (64 MiB VMEM), add an HW-tiled
    # apply path (IN stats hoisted into pass 1) so pass 2 grids over HW chunks.

    return out4.reshape(N, C, H, W)


# ----------------------------------------------------------------------------
# Odd-C fallback: full-channel blocks, in-kernel channel slice.
# ----------------------------------------------------------------------------
def _bn_stats_kernel_oddc(x_ref, g_ref, b_ref, scale_ref, shift_ref,
                          *, half1, half2, count):
    n = pl.program_id(0)

    @pl.when(n == 0)
    def _init():
        scale_ref[...] = jnp.zeros_like(scale_ref)
        shift_ref[...] = jnp.zeros_like(shift_ref)

    xbn = x_ref[0, pl.ds(half1, half2), :].astype(jnp.float32)
    scale_ref[...] += jnp.sum(xbn, axis=-1, keepdims=True)
    shift_ref[...] += jnp.sum(xbn * xbn, axis=-1, keepdims=True)

    @pl.when(n == pl.num_programs(0) - 1)
    def _finalize():
        mean = scale_ref[...] * (1.0 / count)
        var = jnp.maximum(shift_ref[...] * (1.0 / count) - mean * mean, 0.0)
        scale = jax.lax.rsqrt(var + _EPS) * g_ref[...]
        scale_ref[...] = scale
        shift_ref[...] = b_ref[...] - mean * scale


def _ibn_apply_kernel_oddc(x_ref, gin_ref, bin_ref, sbn_ref, tbn_ref, o_ref,
                           *, half1, half2, inv_hw):
    xin = x_ref[0, pl.ds(0, half1), :].astype(jnp.float32)
    mu = jnp.sum(xin, axis=-1, keepdims=True) * inv_hw
    var = jnp.sum(jnp.square(xin - mu), axis=-1, keepdims=True) * inv_hw
    a = jax.lax.rsqrt(var + _EPS) * gin_ref[...]
    b = bin_ref[...] - mu * a
    o_ref[0, pl.ds(0, half1), :] = (xin * a + b).astype(o_ref.dtype)

    xbn = x_ref[0, pl.ds(half1, half2), :].astype(jnp.float32)
    o_ref[0, pl.ds(half1, half2), :] = (
        xbn * sbn_ref[...] + tbn_ref[...]).astype(o_ref.dtype)


def _ibn_forward_odd(x, gamma_in, beta_in, gamma_bn, beta_bn):
    N, C, H, W = x.shape
    half1 = C // 2
    half2 = C - half1
    HW = H * W
    itemsize = x.dtype.itemsize

    x3 = x.reshape(N, C, HW)
    gin = gamma_in.astype(jnp.float32).reshape(half1, 1)
    bin_ = beta_in.astype(jnp.float32).reshape(half1, 1)
    gbn = gamma_bn.astype(jnp.float32).reshape(half2, 1)
    bbn = beta_bn.astype(jnp.float32).reshape(half2, 1)

    x_spec = pl.BlockSpec((1, C, HW), lambda n: (n, 0, 0))
    p_in_spec = pl.BlockSpec((half1, 1), lambda n: (0, 0))
    p_bn_spec = pl.BlockSpec((half2, 1), lambda n: (0, 0))
    blk = C * HW * itemsize

    scale_bn, shift_bn = pl.pallas_call(
        functools.partial(_bn_stats_kernel_oddc,
                          half1=half1, half2=half2, count=float(N * HW)),
        out_shape=(jax.ShapeDtypeStruct((half2, 1), jnp.float32),
                   jax.ShapeDtypeStruct((half2, 1), jnp.float32)),
        grid=(N,),
        in_specs=[x_spec, p_bn_spec, p_bn_spec],
        out_specs=(p_bn_spec, p_bn_spec),
        compiler_params=pltpu.CompilerParams(
            dimension_semantics=("arbitrary",),
            vmem_limit_bytes=_vmem_limit(2 * blk + (2 << 20))),
    )(x3, gbn, bbn)

    out3 = pl.pallas_call(
        functools.partial(_ibn_apply_kernel_oddc,
                          half1=half1, half2=half2, inv_hw=1.0 / HW),
        out_shape=jax.ShapeDtypeStruct((N, C, HW), x.dtype),
        grid=(N,),
        in_specs=[x_spec, p_in_spec, p_in_spec, p_bn_spec, p_bn_spec],
        out_specs=x_spec,
        compiler_params=pltpu.CompilerParams(
            dimension_semantics=("parallel",),
            vmem_limit_bytes=_vmem_limit(4 * blk + (2 << 20))),
    )(x3, gin, bin_, scale_bn, shift_bn)
    return out3.reshape(N, C, H, W)


def ibn_forward(x, gamma_in, beta_in, gamma_bn, beta_bn, *,
                max_block_bytes=8 << 20):
    """IBN forward. x: (N, C, H, W) -> (N, C, H, W)."""
    _, C, _, _ = x.shape
    # TODO(synk): PyTorch BatchNorm2d (train mode) also updates running_mean /
    # running_var buffers; those module-state updates are not computed here.
    if C % 2 == 0:
        return _ibn_forward_even(x, gamma_in, beta_in, gamma_bn, beta_bn,
                                 max_block_bytes)
    return _ibn_forward_odd(x, gamma_in, beta_in, gamma_bn, beta_bn)


def _reference(x, gamma_in, beta_in, gamma_bn, beta_bn):
    """Pure-JAX reference matching PyTorch IBN forward (BN in training mode)."""
    N, C, H, W = x.shape
    half1 = C // 2
    x1, x2 = x[:, :half1], x[:, half1:]
    mu = jnp.mean(x1, axis=(2, 3), keepdims=True)
    var = jnp.mean((x1 - mu) ** 2, axis=(2, 3), keepdims=True)
    o1 = (x1 - mu) * jax.lax.rsqrt(var + _EPS)
    o1 = o1 * gamma_in[None, :, None, None] + beta_in[None, :, None, None]
    mu2 = jnp.mean(x2, axis=(0, 2, 3), keepdims=True)
    var2 = jnp.mean((x2 - mu2) ** 2, axis=(0, 2, 3), keepdims=True)
    o2 = (x2 - mu2) * jax.lax.rsqrt(var2 + _EPS)
    o2 = o2 * gamma_bn[None, :, None, None] + beta_bn[None, :, None, None]
    return jnp.concatenate([o1, o2], axis=1)


if __name__ == "__main__":
    key = jax.random.PRNGKey(0)
    kx, kg1, kb1, kg2, kb2 = jax.random.split(key, 5)

    N, C, H, W = 2, 4, 16, 16          # planes = 4 -> half = 2
    half1 = C // 2
    half2 = C - half1

    x = jax.random.normal(kx, (N, C, H, W), dtype=jnp.float32)
    # PyTorch inits affine params to 1 / 0; perturb deterministically so the
    # affine path is actually exercised.
    gamma_in = 1.0 + 0.1 * jax.random.normal(kg1, (half1,), dtype=jnp.float32)
    beta_in = 0.1 * jax.random.normal(kb1, (half1,), dtype=jnp.float32)
    gamma_bn = 1.0 + 0.1 * jax.random.normal(kg2, (half2,), dtype=jnp.float32)
    beta_bn = 0.1 * jax.random.normal(kb2, (half2,), dtype=jnp.float32)

    ref = _reference(x, gamma_in, beta_in, gamma_bn, beta_bn)

    # Default path: full batch fits one block (grid of 1 step).
    out = jax.block_until_ready(
        ibn_forward(x, gamma_in, beta_in, gamma_bn, beta_bn))
    assert out.shape == (N, C, H, W)
    err = jnp.max(jnp.abs(out - ref))
    assert err < 1e-4, f"Pallas IBN mismatch vs reference: {err}"

    # Force TN=1 so the multi-step streaming-stats combine path is exercised.
    out2 = jax.block_until_ready(
        ibn_forward(x, gamma_in, beta_in, gamma_bn, beta_bn, max_block_bytes=1))
    err2 = jnp.max(jnp.abs(out2 - ref))
    assert err2 < 1e-4, f"Pallas IBN (streaming stats) mismatch: {err2}"

    print("KERNEL_OK")
</pallas_src>

<mosaic_0001>
module attributes {stable_mosaic.version = 11 : i64} {
  func.func @_bn_stats_kernel(%arg0: i32, %arg1: memref<2x1x2x256xf32, #tpu.memory_space<vmem>>, %arg2: memref<1x1x2x1xf32, #tpu.memory_space<vmem>>, %arg3: memref<1x1x2x1xf32, #tpu.memory_space<vmem>>, %arg4: memref<1x1x2x1xf32, #tpu.memory_space<vmem>>, %arg5: memref<1x1x2x1xf32, #tpu.memory_space<vmem>>) attributes {dimension_semantics = [#tpu.dimension_semantics<arbitrary>], iteration_bounds = array<i64: 1>, scalar_prefetch = 0 : i64, scratch_operands = 0 : i64, tpu.core_type = #tpu.core_type<tc>, window_params = [{transform_indices = @transform_0, window_bounds = array<i64: 2, 1, 2, 256>}, {pipeline_mode = #tpu.pipeline_mode<synchronous>, transform_indices = @transform_1, window_bounds = array<i64: 1, 1, 2, 1>}, {pipeline_mode = #tpu.pipeline_mode<synchronous>, transform_indices = @transform_2, window_bounds = array<i64: 1, 1, 2, 1>}, {pipeline_mode = #tpu.pipeline_mode<synchronous>, transform_indices = @transform_3, window_bounds = array<i64: 1, 1, 2, 1>}, {pipeline_mode = #tpu.pipeline_mode<synchronous>, transform_indices = @transform_4, window_bounds = array<i64: 1, 1, 2, 1>}]} {
    %c0 = arith.constant 0 : index
    %c0_0 = arith.constant 0 : index
    %c0_1 = arith.constant 0 : index
    %c0_2 = arith.constant 0 : index
    %0 = vector.load %arg1[%c0, %c0_0, %c0_1, %c0_2] : memref<2x1x2x256xf32, #tpu.memory_space<vmem>>, vector<2x1x2x256xf32>
    %cst = arith.constant dense<0.000000e+00> : vector<2x1x2xf32>
    %1 = vector.multi_reduction <add>, %0, %cst [3] : vector<2x1x2x256xf32> to vector<2x1x2xf32>
    %2 = vector.shape_cast %1 : vector<2x1x2xf32> to vector<2x1x2x1xf32>
    %cst_3 = arith.constant dense<0.000000e+00> : vector<1x2x1xf32>
    %3 = vector.multi_reduction <add>, %2, %cst_3 [0] : vector<2x1x2x1xf32> to vector<1x2x1xf32>
    %4 = vector.shape_cast %3 : vector<1x2x1xf32> to vector<1x1x2x1xf32>
    %cst_4 = arith.constant 0.001953125 : f32
    %5 = vector.broadcast %cst_4 : f32 to vector<1x1x2x1xf32>
    %6 = arith.mulf %4, %5 : vector<1x1x2x1xf32>
    %7 = vector.broadcast %6 : vector<1x1x2x1xf32> to vector<2x1x2x256xf32>
    %8 = arith.subf %0, %7 : vector<2x1x2x256xf32>
    %9 = arith.mulf %8, %8 : vector<2x1x2x256xf32>
    %cst_5 = arith.constant dense<0.000000e+00> : vector<2x1x2xf32>
    %10 = vector.multi_reduction <add>, %9, %cst_5 [3] : vector<2x1x2x256xf32> to vector<2x1x2xf32>
    %11 = vector.shape_cast %10 : vector<2x1x2xf32> to vector<2x1x2x1xf32>
    %cst_6 = arith.constant dense<0.000000e+00> : vector<1x2x1xf32>
    %12 = vector.multi_reduction <add>, %11, %cst_6 [0] : vector<2x1x2x1xf32> to vector<1x2x1xf32>
    %13 = vector.shape_cast %12 : vector<1x2x1xf32> to vector<1x1x2x1xf32>
    %c0_i32 = arith.constant 0 : i32
    %14 = arith.cmpi eq, %arg0, %c0_i32 : i32
    %15 = arith.extui %14 : i1 to i32
    %c0_i32_7 = arith.constant 0 : i32
    %16 = arith.cmpi ne, %15, %c0_i32_7 : i32
    scf.if %16 {
      %c0_12 = arith.constant 0 : index
      %c0_13 = arith.constant 0 : index
      %c0_14 = arith.constant 0 : index
      %c0_15 = arith.constant 0 : index
      %23 = vector.load %arg4[%c0_12, %c0_13, %c0_14, %c0_15] : memref<1x1x2x1xf32, #tpu.memory_space<vmem>>, vector<1x1x2x1xf32>
      tpu.vector_store %arg4[%c0_12, %c0_13, %c0_14, %c0_15], %6 {strides = array<i32>} : memref<1x1x2x1xf32, #tpu.memory_space<vmem>>, vector<1x1x2x1xf32>,
      %c0_16 = arith.constant 0 : index
      %c0_17 = arith.constant 0 : index
      %c0_18 = arith.constant 0 : index
      %c0_19 = arith.constant 0 : index
      %24 = vector.load %arg5[%c0_16, %c0_17, %c0_18, %c0_19] : memref<1x1x2x1xf32, #tpu.memory_space<vmem>>, vector<1x1x2x1xf32>
      tpu.vector_store %arg5[%c0_16, %c0_17, %c0_18, %c0_19], %13 {strides = array<i32>} : memref<1x1x2x1xf32, #tpu.memory_space<vmem>>, vector<1x1x2x1xf32>,
    } else {
    }
    %c0_i32_8 = arith.constant 0 : i32
    %17 = arith.cmpi sgt, %arg0, %c0_i32_8 : i32
    %18 = arith.extui %17 : i1 to i32
    %c0_i32_9 = arith.constant 0 : i32
    %19 = arith.cmpi ne, %18, %c0_i32_9 : i32
    scf.if %19 {
      %23 = arith.sitofp %arg0 : i32 to f32
      %cst_12 = arith.constant 5.120000e+02 : f32
      %24 = arith.mulf %23, %cst_12 : f32
      %cst_13 = arith.constant 5.120000e+02 : f32
      %25 = arith.addf %24, %cst_13 : f32
      %c0_14 = arith.constant 0 : index
      %c0_15 = arith.constant 0 : index
      %c0_16 = arith.constant 0 : index
      %c0_17 = arith.constant 0 : index
      %26 = vector.load %arg4[%c0_14, %c0_15, %c0_16, %c0_17] : memref<1x1x2x1xf32, #tpu.memory_space<vmem>>, vector<1x1x2x1xf32>
      %27 = arith.subf %6, %26 : vector<1x1x2x1xf32>
      %c0_18 = arith.constant 0 : index
      %c0_19 = arith.constant 0 : index
      %c0_20 = arith.constant 0 : index
      %c0_21 = arith.constant 0 : index
      %28 = vector.load %arg4[%c0_18, %c0_19, %c0_20, %c0_21] : memref<1x1x2x1xf32, #tpu.memory_space<vmem>>, vector<1x1x2x1xf32>
      %cst_22 = arith.constant 5.120000e+02 : f32
      %29 = arith.divf %cst_22, %25 : f32
      %30 = vector.broadcast %29 : f32 to vector<1x1x2x1xf32>
      %31 = arith.mulf %27, %30 : vector<1x1x2x1xf32>
      %32 = arith.addf %28, %31 : vector<1x1x2x1xf32>
      %c0_23 = arith.constant 0 : index
      %c0_24 = arith.constant 0 : index
      %c0_25 = arith.constant 0 : index
      %c0_26 = arith.constant 0 : index
      %33 = vector.load %arg4[%c0_23, %c0_24, %c0_25, %c0_26] : memref<1x1x2x1xf32, #tpu.memory_space<vmem>>, vector<1x1x2x1xf32>
      tpu.vector_store %arg4[%c0_23, %c0_24, %c0_25, %c0_26], %32 {strides = array<i32>} : memref<1x1x2x1xf32, #tpu.memory_space<vmem>>, vector<1x1x2x1xf32>,
      %c0_27 = arith.constant 0 : index
      %c0_28 = arith.constant 0 : index
      %c0_29 = arith.constant 0 : index
      %c0_30 = arith.constant 0 : index
      %34 = vector.load %arg5[%c0_27, %c0_28, %c0_29, %c0_30] : memref<1x1x2x1xf32, #tpu.memory_space<vmem>>, vector<1x1x2x1xf32>
      %35 = arith.addf %34, %13 : vector<1x1x2x1xf32>
      %36 = arith.mulf %27, %27 : vector<1x1x2x1xf32>
      %cst_31 = arith.constant 5.120000e+02 : f32
      %37 = arith.mulf %24, %cst_31 : f32
      %38 = arith.divf %37, %25 : f32
      %39 = vector.broadcast %38 : f32 to vector<1x1x2x1xf32>
      %40 = arith.mulf %36, %39 : vector<1x1x2x1xf32>
      %41 = arith.addf %35, %40 : vector<1x1x2x1xf32>
      %c0_32 = arith.constant 0 : index
      %c0_33 = arith.constant 0 : index
      %c0_34 = arith.constant 0 : index
      %c0_35 = arith.constant 0 : index
      %42 = vector.load %arg5[%c0_32, %c0_33, %c0_34, %c0_35] : memref<1x1x2x1xf32, #tpu.memory_space<vmem>>, vector<1x1x2x1xf32>
      tpu.vector_store %arg5[%c0_32, %c0_33, %c0_34, %c0_35], %41 {strides = array<i32>} : memref<1x1x2x1xf32, #tpu.memory_space<vmem>>, vector<1x1x2x1xf32>,
    } else {
    }
    %c0_i32_10 = arith.constant 0 : i32
    %20 = arith.cmpi eq, %arg0, %c0_i32_10 : i32
    %21 = arith.extui %20 : i1 to i32
    %c0_i32_11 = arith.constant 0 : i32
    %22 = arith.cmpi ne, %21, %c0_i32_11 : i32
    scf.if %22 {
      %c0_12 = arith.constant 0 : index
      %c0_13 = arith.constant 0 : index
      %c0_14 = arith.constant 0 : index
      %c0_15 = arith.constant 0 : index
      %23 = vector.load %arg4[%c0_12, %c0_13, %c0_14, %c0_15] : memref<1x1x2x1xf32, #tpu.memory_space<vmem>>, vector<1x1x2x1xf32>
      %c0_16 = arith.constant 0 : index
      %c0_17 = arith.constant 0 : index
      %c0_18 = arith.constant 0 : index
      %c0_19 = arith.constant 0 : index
      %24 = vector.load %arg5[%c0_16, %c0_17, %c0_18, %c0_19] : memref<1x1x2x1xf32, #tpu.memory_space<vmem>>, vector<1x1x2x1xf32>
      %cst_20 = arith.constant 0.001953125 : f32
      %25 = vector.broadcast %cst_20 : f32 to vector<1x1x2x1xf32>
      %26 = arith.mulf %24, %25 : vector<1x1x2x1xf32>
      %cst_21 = arith.constant 0.000000e+00 : f32
      %27 = vector.broadcast %cst_21 : f32 to vector<1x1x2x1xf32>
      %28 = arith.maximumf %26, %27 : vector<1x1x2x1xf32>
      %cst_22 = arith.constant 9.99999974E-6 : f32
      %29 = vector.broadcast %cst_22 : f32 to vector<1x1x2x1xf32>
      %30 = arith.addf %28, %29 : vector<1x1x2x1xf32>
      %31 = math.rsqrt %30 : vector<1x1x2x1xf32>
      %c0_23 = arith.constant 0 : index
      %c0_24 = arith.constant 0 : index
      %c0_25 = arith.constant 0 : index
      %c0_26 = arith.constant 0 : index
      %32 = vector.load %arg2[%c0_23, %c0_24, %c0_25, %c0_26] : memref<1x1x2x1xf32, #tpu.memory_space<vmem>>, vector<1x1x2x1xf32>
      %33 = arith.mulf %31, %32 : vector<1x1x2x1xf32>
      %c0_27 = arith.constant 0 : index
      %c0_28 = arith.constant 0 : index
      %c0_29 = arith.constant 0 : index
      %c0_30 = arith.constant 0 : index
      %34 = vector.load %arg4[%c0_27, %c0_28, %c0_29, %c0_30] : memref<1x1x2x1xf32, #tpu.memory_space<vmem>>, vector<1x1x2x1xf32>
      tpu.vector_store %arg4[%c0_27, %c0_28, %c0_29, %c0_30], %33 {strides = array<i32>} : memref<1x1x2x1xf32, #tpu.memory_space<vmem>>, vector<1x1x2x1xf32>,
      %c0_31 = arith.constant 0 : index
      %c0_32 = arith.constant 0 : index
      %c0_33 = arith.constant 0 : index
      %c0_34 = arith.constant 0 : index
      %35 = vector.load %arg3[%c0_31, %c0_32, %c0_33, %c0_34] : memref<1x1x2x1xf32, #tpu.memory_space<vmem>>, vector<1x1x2x1xf32>
      %36 = arith.mulf %23, %33 : vector<1x1x2x1xf32>
      %37 = arith.subf %35, %36 : vector<1x1x2x1xf32>
      %c0_35 = arith.constant 0 : index
      %c0_36 = arith.constant 0 : index
      %c0_37 = arith.constant 0 : index
      %c0_38 = arith.constant 0 : index
      %38 = vector.load %arg5[%c0_35, %c0_36, %c0_37, %c0_38] : memref<1x1x2x1xf32, #tpu.memory_space<vmem>>, vector<1x1x2x1xf32>
      tpu.vector_store %arg5[%c0_35, %c0_36, %c0_37, %c0_38], %37 {strides = array<i32>} : memref<1x1x2x1xf32, #tpu.memory_space<vmem>>, vector<1x1x2x1xf32>,
    } else {
    }
    return
  }
  func.func @transform_0(%arg0: i32) -> (i32, i32, i32, i32) {
    %c1_i32 = arith.constant 1 : i32
    %c0_i32 = arith.constant 0 : i32
    %c0_i32_0 = arith.constant 0 : i32
    %c0_i32_1 = arith.constant 0 : i32
    return %arg0, %c1_i32, %c0_i32, %c0_i32_0 : i32, i32, i32, i32
  }
  func.func @transform_1(%arg0: i32) -> (i32, i32, i32, i32) {
    %c0_i32 = arith.constant 0 : i32
    %c0_i32_0 = arith.constant 0 : i32
    %c0_i32_1 = arith.constant 0 : i32
    %c0_i32_2 = arith.constant 0 : i32
    %c0_i32_3 = arith.constant 0 : i32
    return %c0_i32, %c0_i32_0, %c0_i32_1, %c0_i32_2 : i32, i32, i32, i32
  }
  func.func @transform_2(%arg0: i32) -> (i32, i32, i32, i32) {
    %c0_i32 = arith.constant 0 : i32
    %c0_i32_0 = arith.constant 0 : i32
    %c0_i32_1 = arith.constant 0 : i32
    %c0_i32_2 = arith.constant 0 : i32
    %c0_i32_3 = arith.constant 0 : i32
    return %c0_i32, %c0_i32_0, %c0_i32_1, %c0_i32_2 : i32, i32, i32, i32
  }
  func.func @transform_3(%arg0: i32) -> (i32, i32, i32, i32) {
    %c0_i32 = arith.constant 0 : i32
    %c0_i32_0 = arith.constant 0 : i32
    %c0_i32_1 = arith.constant 0 : i32
    %c0_i32_2 = arith.constant 0 : i32
    %c0_i32_3 = arith.constant 0 : i32
    return %c0_i32, %c0_i32_0, %c0_i32_1, %c0_i32_2 : i32, i32, i32, i32
  }
  func.func @transform_4(%arg0: i32) -> (i32, i32, i32, i32) {
    %c0_i32 = arith.constant 0 : i32
    %c0_i32_0 = arith.constant 0 : i32
    %c0_i32_1 = arith.constant 0 : i32
    %c0_i32_2 = arith.constant 0 : i32
    %c0_i32_3 = arith.constant 0 : i32
    return %c0_i32, %c0_i32_0, %c0_i32_1, %c0_i32_2 : i32, i32, i32, i32
  }
}

</mosaic_0001>

<bundles_post_ra>
// kernel: tpu_custom_call.1
= control target key start
LH: loop header
LB: loop body
LE: loop exit
PB: predicated region body
PF: predicated region fallthrough
CT: control target
= control target key end

     0   :  { %10 = vsyncpa [#allocation3], 0  ;;  %s214_s18 = smov [#allocation2]   ;;  %s288_s0 = inlined_call_operand.hbm [shape: f32[2,2,2,256], index: 0, kind: input, shape index: {}]   ;;  %s289_s1 = inlined_call_operand.vmem [shape: f32[1,1,2,1], index: 1, kind: input, shape index: {}]   ;;  %s290_s2 = inlined_call_operand.vmem [shape: f32[1,1,2,1], index: 2, kind: input, shape index: {}]   ;;  %s291_s3 = inlined_call_operand.vmem [shape: f32[1,1,2,1], index: 3, kind: output, shape index: {0}]   ;;  %s292_s4 = inlined_call_operand.vmem [shape: f32[1,1,2,1], index: 4, kind: output, shape index: {1}]  }
   0x1   :  { %s16_s17 = scalar_lea.hbm %s288_s0, 64  ;;  %s17_s19 = sshll.u32 %s214_s18, 4  ;;  %s18_s19 = int_to_ptr.vmem [resolvable:$true] %s17_s19 }
   0x2   :  { %s199_s20 = scalar_lea.vmem %s18_s19, 128  ;;  %p204_p1 = scmp.lt.s32.totalorder %s18_s19, %s18_s19 }
   0x3   :  { %p200_p0 = scmp.ne.s32.totalorder %s18_s19, %s199_s20  ;;  %p205_p2 = scmp.lt.s32.totalorder %s199_s20, %s199_s20 }
   0x5   :  { %p206_p3 = por %p205_p2, %p204_p1 }
   0x7   :  { %p207_p4 = pnand %p206_p3, %p200_p0 }
   0x9   :  { %210 = shalt.err (!%p207_p4)
}
   0xa   :  { %s215_s21 = smov 128   ;;  %s216_s22 = smov 64  }
   0xb   :  { %s217_s23 = smov 4  }
   0xc   :  { %23 = dma.hbm_to_vmem [thread:$0]  %s16_s17, 128, %s18_s19, [#allocation3], %s215_s21, %s216_s22, %s217_s23  }
   0xd   :  { %212 = dma.done.wait [#allocation3], 128  }
   0xe   :  { %213 = vsyncadd [#allocation3], 4294967168  ;;  %v38_v0 = vlaneseq  ;;  %v218_v1 = vmov 1983009808   ;;  %v31_v6 = vld [vmem:[#allocation2] sm:$0xf] }
   0xf   :  { %v36_v2 = vunpack.c.l.s4 %v218_v1  ;;  %vm55_vm0 = vcmask 1041408   ;;  %v32_v7 = vld [vmem:[#allocation2 + $0x4] sm:$0xf]  ;;  %v219_v18 = vmov 269488144   ;;  %vm122_vm1 = vcmask 1024  }
  0x10   :  { %v39_v3 = vshrl.u32 %v38_v0, 7  ;;  %v72_v19 = vunpack.c.l.s4 %v219_v18  ;;  %v164_v52 = vld [vmem:[%s289_s1] sm:$0x3] }
  0x11   :  { %v37_v4 = vunpack.c.0.s8 %v36_v2  ;;  %v168_v56 = vld [vmem:[%s290_s2] sm:$0x3] }
  0x12   :  { %v73_v21 = vunpack.c.0.s8 %v72_v19 }
  0x13   :  { %v40_v5 = vsub.s32 %v37_v4, %v39_v3 }
  0x14   :  { %v76_v25 = vsub.s32 %v73_v21, %v39_v3 }
  0x15   :  { %v41_v8 = vrot.slane %v31_v6, %v40_v5  ;;  %v49_v9 = vrot.slane %v32_v7, %v40_v5 }
  0x17   :  { %v42_v10 = vcombine.high %v41_v8, %v41_v8  ;;  %v56_v11 = vsel %vm55_vm0, %v41_v8, 0.0  ;;  %v50_v12 = vcombine.high %v49_v9, %v49_v9  ;;  %v61_v14 = vsel %vm55_vm0, %v49_v9, 0.0 }
  0x19   :  { %v57_v13 = vsel %vm55_vm0, %v42_v10, 0.0  ;;  %v62_v15 = vsel %vm55_vm0, %v50_v12, 0.0 }
  0x1a   :  { %v58_v16 = vadd.f32 %v57_v13, %v56_v11  ;;  %v63_v17 = vadd.f32 %v62_v15, %v61_v14 }
  0x1c   :  { %59 = vadd.xlane.f32.xlu0 %v58_v16 }
  0x20   :  { %64 = vadd.xlane.f32.xlu0 %v63_v17 }
  0xa5   :  { %v60_v20 = vpop.xlane.xlu0 %59 }
  0xa6   :  { %v66_v23 = vsel %vm55_vm0, %v60_v20, 0.0 }
  0xa9   :  { %v65_v22 = vpop.xlane.xlu0 %64 }
  0xaa   :  { %v67_v24 = vsel %vm55_vm0, %v65_v22, 0.0 }
  0xab   :  { %v68_v26 = vadd.f32 %v67_v24, %v66_v23 }
  0xad   :  { %v69_v27 = vmul.f32 0.001953125, %v68_v26 }
  0xaf   :  { %v77_v28 = vrot.slane %v69_v27, %v76_v25  ;;  %123 = vst.msk [vmem:[%s291_s3] sm:$0x3] %vm122_vm1, %v69_v27 }
  0xb1   :  { %v80_v29 = vsub.f32 %v32_v7, %v77_v28  ;;  %v79_v30 = vsub.f32 %v31_v6, %v77_v28 }
  0xb3   :  { %v81_v31 = vmul.f32 %v79_v30, %v79_v30  ;;  %v82_v32 = vmul.f32 %v80_v29, %v80_v29 }
  0xb5   :  { %v91_v33 = vrot.slane %v81_v31, %v40_v5  ;;  %v99_v34 = vrot.slane %v82_v32, %v40_v5 }
  0xb6   :  { %v158_v55 = vld [vmem:[%s291_s3] sm:$0x3] }
  0xb7   :  { %v92_v35 = vcombine.high %v91_v33, %v91_v33  ;;  %v100_v36 = vcombine.high %v99_v34, %v99_v34  ;;  %v105_v37 = vsel %vm55_vm0, %v91_v33, 0.0  ;;  %v110_v41 = vsel %vm55_vm0, %v99_v34, 0.0 }
  0xb9   :  { %v106_v38 = vsel %vm55_vm0, %v92_v35, 0.0  ;;  %v111_v40 = vsel %vm55_vm0, %v100_v36, 0.0 }
  0xba   :  { %v107_v39 = vadd.f32 %v106_v38, %v105_v37  ;;  %v112_v42 = vadd.f32 %v111_v40, %v110_v41 }
  0xbc   :  { %108 = vadd.xlane.f32.xlu1 %v107_v39 }
  0xc0   :  { %113 = vadd.xlane.f32.xlu1 %v112_v42 }
 0x145   :  { %v109_v43 = vpop.xlane.xlu1 %108 }
 0x146   :  { %v115_v45 = vsel %vm55_vm0, %v109_v43, 0.0 }
 0x149   :  { %v114_v44 = vpop.xlane.xlu1 %113 }
 0x14a   :  { %v116_v46 = vsel %vm55_vm0, %v114_v44, 0.0 }
 0x14b   :  { %v117_v47 = vadd.f32 %v116_v46, %v115_v45 }
 0x14d   :  { %124 = vst.msk [vmem:[%s292_s4] sm:$0x3] %vm122_vm1, %v117_v47 }
 0x154   :  { %v159_v48 = vld [vmem:[%s292_s4] sm:$0x3] }
 0x155   :  { %v160_v49 = vmul.f32 0.001953125, %v159_v48 }
 0x157   :  { %v161_v50 = vmax.f32 %v160_v49, 0.0 }
 0x159   :  { %v162_v51 = vadd.f32 1e-05, %v161_v50 }
 0x15b   :  { %187 = vrsqrt.f32 %v162_v51 }
 0x168   :  { %v188_v53 = vpop.eup %187 }
 0x169   :  { %v165_v54 = vmul.f32 %v188_v53, %v164_v52 }
 0x16b   :  { %167 = vst.msk [vmem:[%s291_s3] sm:$0x3] %vm122_vm1, %v165_v54  ;;  %v169_v57 = vmul.f32 %v165_v54, %v158_v55 }
 0x16d   :  { %v170_v58 = vsub.f32 %v168_v56, %v169_v57 }
 0x16f   :  { %171 = vst.msk [vmem:[%s292_s4] sm:$0x3] %vm122_vm1, %v170_v58 }
 0x170   :  { %180 = vsyncpa [#allocation3], 1 }

</bundles_post_ra>
